<compile_context>
chip_gen: v7x
topology: tpu7x:2x2x1
jax: 0.10.0
libtpu: 0.0.40
codegen_flags: <defaults>
</compile_context>

<pallas_src>
import functools

import jax
import jax.numpy as jnp
import numpy as np
from jax.experimental import pallas as pl
from jax.experimental.pallas import tpu as pltpu

NUM_TAPS = 9          # horizontal offsets -4 .. +4
_HALF = NUM_TAPS // 2
_PAD = 128            # lane-aligned zero pad on each side of the row block


def _scatter_h_kernel(x_ref, w_ref, col_ref, o_ref, pad_ref, slab_ref, *, W):
    """x_ref: (Cin, L)    w_ref: (Cout, 9*Cin + 9)    col_ref: (1, L) int32
       o_ref: (Cout, L)   pad_ref: (Cin, L + 2*_PAD)  slab_ref: (9*Cin+9, L)
       L = TH * W (flattened block of TH image rows)."""
    Cin, L = x_ref.shape

    # Zero-padded copy of the input block (lane-aligned write at offset _PAD).
    pad_ref[:, :_PAD] = jnp.zeros((Cin, _PAD), jnp.float32)
    pad_ref[:, _PAD + L:] = jnp.zeros((Cin, _PAD), jnp.float32)
    pad_ref[:, _PAD:_PAD + L] = x_ref[...]

    col = col_ref[...]            # per-position column index within its row

    # im2col slab: 9 horizontally shifted, boundary-masked copies of x plus
    # 9 mask rows (these carry the per-tap bias through the matmul).
    for k in range(NUM_TAPS):                       # static unroll over taps
        dk = k - _HALF
        src = pad_ref[:, _PAD - dk:_PAD - dk + L]   # src[:, p] == x[:, p - dk]
        if dk == 0:
            shifted = src
            mask_row = jnp.ones((1, L), jnp.float32)
        else:
            valid = jnp.logical_and(col >= max(dk, 0), col < W + min(dk, 0))
            shifted = jnp.where(valid, src, 0.0)
            mask_row = valid.astype(jnp.float32)
        slab_ref[k * Cin:(k + 1) * Cin, :] = shifted
        slab_ref[NUM_TAPS * Cin + k:NUM_TAPS * Cin + k + 1, :] = mask_row

    # Single fused MXU matmul: (Cout, 9*Cin+9) @ (9*Cin+9, L) -> (Cout, L).
    y = jnp.dot(w_ref[...], slab_ref[...], preferred_element_type=jnp.float32)
    o_ref[...] = y.astype(o_ref.dtype)


def _choose_row_tile(H, W, cin, cout, budget_bytes=12 * 1024 * 1024):
    """Largest row tile TH with H % TH == 0, lane-aligned flattened block
    (TH*W % 128 == 0, or TH == H), footprint under budget, preferring >= 2
    grid steps along H so both v7x TensorCores get work."""
    slab_rows = NUM_TAPS * cin + NUM_TAPS
    bytes_per_pos = 4 * (2 * (cin + cout) + slab_rows + cin + cout)
    valid = [th for th in range(1, H + 1)
             if H % th == 0 and ((th * W) % 128 == 0 or th == H)]
    fit = [th for th in valid if bytes_per_pos * th * W <= budget_bytes]
    multi = [th for th in fit if H // th >= 2]
    if multi:
        return max(multi)
    if fit:
        return max(fit)
    return min(valid)


def scatter_horizontal(x_nchw, weights, bias, *, row_tile=None):
    """x_nchw: (N, Cin, H, W); weights: (9, Cout, Cin); bias: (9, Cout)."""
    N, Cin, H, W = x_nchw.shape
    taps, Cout, Cin_w = weights.shape
    assert taps == NUM_TAPS and Cin_w == Cin and bias.shape == (NUM_TAPS, Cout)

    TH = row_tile if row_tile is not None else _choose_row_tile(H, W, Cin, Cout)
    assert H % TH == 0 and ((TH * W) % 128 == 0 or TH == H)
    L = TH * W
    K = NUM_TAPS * Cin + NUM_TAPS

    # NCHW-native: only free metadata reshapes, no HBM transposes of x / out.
    x_flat = x_nchw.reshape(N, Cin, H * W).astype(jnp.float32)

    # Fused weight [W_0 | ... | W_8 | b_0 ... b_8] -> (Cout, 9*Cin + 9).
    # (On v6e/v7x, x_flat / wf could be cast to bfloat16 here if the accuracy
    #  budget allows; kept f32 to match the reference exactly.)
    wf = jnp.transpose(weights, (1, 0, 2)).reshape(Cout, NUM_TAPS * Cin)
    wf = jnp.concatenate([wf, jnp.transpose(bias, (1, 0))],
                         axis=1).astype(jnp.float32)

    # Column index (within its image row) of every position in a row block.
    col = jnp.tile(jnp.arange(W, dtype=jnp.int32), TH).reshape(1, L)

    kernel = functools.partial(_scatter_h_kernel, W=W)

    out_flat = pl.pallas_call(
        kernel,
        out_shape=jax.ShapeDtypeStruct((N, Cout, H * W), jnp.float32),
        grid_spec=pltpu.PrefetchScalarGridSpec(
            num_scalar_prefetch=0,
            grid=(N, H // TH),
            in_specs=[
                pl.BlockSpec((None, Cin, L), lambda n, h: (n, 0, h)),
                pl.BlockSpec((Cout, K), lambda n, h: (0, 0)),
                pl.BlockSpec((1, L), lambda n, h: (0, 0)),
            ],
            out_specs=pl.BlockSpec((None, Cout, L), lambda n, h: (n, 0, h)),
            scratch_shapes=[
                pltpu.VMEM((Cin, L + 2 * _PAD), jnp.float32),  # padded input
                pltpu.VMEM((K, L), jnp.float32),               # im2col slab
            ],
        ),
        compiler_params=pltpu.CompilerParams(
            dimension_semantics=("parallel", "parallel"),
            vmem_limit_bytes=32 * 1024 * 1024,
        ),
        cost_estimate=pl.CostEstimate(
            flops=2 * N * H * W * K * Cout,
            transcendentals=0,
            bytes_accessed=4 * (N * (Cin + Cout) * H * W + Cout * K + L),
        ),
    )(x_flat, wf, col)

    return out_flat.reshape(N, Cout, H, W)


def scatter_horizontal_ref(x_nchw, weights, bias):
    """Plain-JAX reference for correctness checking."""
    N, Cin, H, W = x_nchw.shape
    _, Cout, _ = weights.shape
    x = jnp.transpose(x_nchw, (0, 2, 3, 1)).astype(jnp.float32)
    out = jnp.zeros((N, H, W, Cout), jnp.float32)
    for k in range(NUM_TAPS):
        y = jnp.einsum("nhwc,oc->nhwo", x, weights[k].astype(jnp.float32))
        y = y + bias[k].astype(jnp.float32)
        dk = k - NUM_TAPS // 2
        if dk > 0:
            out = out.at[:, :, dk:, :].add(y[:, :, : W - dk, :])
        elif dk < 0:
            out = out.at[:, :, : W + dk, :].add(y[:, :, -dk:, :])
        else:
            out = out + y
    return jnp.transpose(out, (0, 3, 1, 2))


if __name__ == "__main__":
    in_channels, out_channels = 4, 8
    N, H, W = 2, 16, 16

    key = jax.random.PRNGKey(0)
    kw, kb, kx = jax.random.split(key, 3)

    # Deterministic parameter init matching nn.Parameter(torch.randn(...)) shapes.
    weights = jax.random.normal(kw, (NUM_TAPS, out_channels, in_channels),
                                dtype=jnp.float32)
    bias = jax.random.normal(kb, (NUM_TAPS, out_channels), dtype=jnp.float32)

    # `inputs` in the PyTorch module is a tuple of feature maps; one NCHW tensor here.
    x = jax.random.normal(kx, (N, in_channels, H, W), dtype=jnp.float32)
    inputs = (x,)

    out = scatter_horizontal(inputs[0], weights, bias)
    out = jax.block_until_ready(out)

    ref = scatter_horizontal_ref(inputs[0], weights, bias)
    np.testing.assert_allclose(np.asarray(out), np.asarray(ref),
                               rtol=1e-3, atol=1e-3)

    print("KERNEL_OK")
</pallas_src>

<mosaic_0001>
module attributes {stable_mosaic.version = 11 : i64} {
  func.func @_scatter_h_kernel(%arg0: i32, %arg1: i32, %arg2: memref<1x4x128xf32, #tpu.memory_space<vmem>>, %arg3: memref<8x45xf32, #tpu.memory_space<vmem>>, %arg4: memref<1x128xi32, #tpu.memory_space<vmem>>, %arg5: memref<1x8x128xf32, #tpu.memory_space<vmem>>, %arg6: memref<4x384xf32, #tpu.memory_space<vmem>>, %arg7: memref<45x128xf32, #tpu.memory_space<vmem>>) attributes {dimension_semantics = [#tpu.dimension_semantics<parallel>, #tpu.dimension_semantics<parallel>], iteration_bounds = array<i64: 2, 2>, scalar_prefetch = 0 : i64, scratch_operands = 2 : i64, tpu.core_type = #tpu.core_type<tc>, window_params = [{transform_indices = @transform_0, window_bounds = array<i64: 1, 4, 128>}, {pipeline_mode = #tpu.pipeline_mode<synchronous>, transform_indices = @transform_1, window_bounds = array<i64: 8, 45>}, {pipeline_mode = #tpu.pipeline_mode<synchronous>, transform_indices = @transform_2, window_bounds = array<i64: 1, 128>}, {transform_indices = @transform_3, window_bounds = array<i64: 1, 8, 128>}]} {
    %cst = arith.constant 0.000000e+00 : f32
    %0 = vector.broadcast %cst : f32 to vector<4x128xf32>
    %c0 = arith.constant 0 : index
    %c0_0 = arith.constant 0 : index
    %1 = vector.load %arg6[%c0, %c0_0] : memref<4x384xf32, #tpu.memory_space<vmem>>, vector<4x128xf32>
    tpu.vector_store %arg6[%c0, %c0_0], %0 {strides = array<i32>} : memref<4x384xf32, #tpu.memory_space<vmem>>, vector<4x128xf32>,
    %cst_1 = arith.constant 0.000000e+00 : f32
    %2 = vector.broadcast %cst_1 : f32 to vector<4x128xf32>
    %c0_2 = arith.constant 0 : index
    %c256 = arith.constant 256 : index
    %3 = vector.load %arg6[%c0_2, %c256] : memref<4x384xf32, #tpu.memory_space<vmem>>, vector<4x128xf32>
    tpu.vector_store %arg6[%c0_2, %c256], %2 {strides = array<i32>} : memref<4x384xf32, #tpu.memory_space<vmem>>, vector<4x128xf32>,
    %c0_3 = arith.constant 0 : index
    %c0_4 = arith.constant 0 : index
    %c0_5 = arith.constant 0 : index
    %4 = vector.load %arg2[%c0_3, %c0_4, %c0_5] : memref<1x4x128xf32, #tpu.memory_space<vmem>>, vector<1x4x128xf32>
    %5 = vector.shape_cast %4 : vector<1x4x128xf32> to vector<4x128xf32>
    %c0_6 = arith.constant 0 : index
    %c128 = arith.constant 128 : index
    %6 = vector.load %arg6[%c0_6, %c128] : memref<4x384xf32, #tpu.memory_space<vmem>>, vector<4x128xf32>
    tpu.vector_store %arg6[%c0_6, %c128], %5 {strides = array<i32>} : memref<4x384xf32, #tpu.memory_space<vmem>>, vector<4x128xf32>,
    %c0_7 = arith.constant 0 : index
    %c0_8 = arith.constant 0 : index
    %7 = vector.load %arg4[%c0_7, %c0_8] : memref<1x128xi32, #tpu.memory_space<vmem>>, vector<1x128xi32>
    %c0_9 = arith.constant 0 : index
    %c132 = arith.constant 132 : index
    %8 = vector.load %arg6[%c0_9, %c132] : memref<4x384xf32, #tpu.memory_space<vmem>>, vector<4x128xf32>
    %c0_i32 = arith.constant 0 : i32
    %9 = vector.broadcast %c0_i32 : i32 to vector<1x128xi32>
    %10 = arith.cmpi sge, %7, %9 : vector<1x128xi32>
    %c12_i32 = arith.constant 12 : i32
    %11 = vector.broadcast %c12_i32 : i32 to vector<1x128xi32>
    %12 = arith.cmpi slt, %7, %11 : vector<1x128xi32>
    %13 = arith.andi %10, %12 : vector<1x128xi1>
    %cst_10 = arith.constant 0.000000e+00 : f32
    %14 = vector.shape_cast %13 : vector<1x128xi1> to vector<1x128xi1>
    %15 = vector.broadcast %14 : vector<1x128xi1> to vector<4x128xi1>
    %16 = vector.broadcast %cst_10 : f32 to vector<4x128xf32>
    %17 = arith.select %15, %8, %16 : vector<4x128xi1>, vector<4x128xf32>
    %18 = arith.extui %13 : vector<1x128xi1> to vector<1x128xi32>
    %19 = arith.sitofp %18 : vector<1x128xi32> to vector<1x128xf32>
    %c0_11 = arith.constant 0 : index
    %c0_12 = arith.constant 0 : index
    %20 = vector.load %arg7[%c0_11, %c0_12] : memref<45x128xf32, #tpu.memory_space<vmem>>, vector<4x128xf32>
    tpu.vector_store %arg7[%c0_11, %c0_12], %17 {strides = array<i32>} : memref<45x128xf32, #tpu.memory_space<vmem>>, vector<4x128xf32>,
    %c36 = arith.constant 36 : index
    %c0_13 = arith.constant 0 : index
    %21 = vector.load %arg7[%c36, %c0_13] : memref<45x128xf32, #tpu.memory_space<vmem>>, vector<1x128xf32>
    tpu.vector_store %arg7[%c36, %c0_13], %19 {strides = array<i32>} : memref<45x128xf32, #tpu.memory_space<vmem>>, vector<1x128xf32>,
    %c0_14 = arith.constant 0 : index
    %c131 = arith.constant 131 : index
    %22 = vector.load %arg6[%c0_14, %c131] : memref<4x384xf32, #tpu.memory_space<vmem>>, vector<4x128xf32>
    %c0_i32_15 = arith.constant 0 : i32
    %23 = vector.broadcast %c0_i32_15 : i32 to vector<1x128xi32>
    %24 = arith.cmpi sge, %7, %23 : vector<1x128xi32>
    %c13_i32 = arith.constant 13 : i32
    %25 = vector.broadcast %c13_i32 : i32 to vector<1x128xi32>
    %26 = arith.cmpi slt, %7, %25 : vector<1x128xi32>
    %27 = arith.andi %24, %26 : vector<1x128xi1>
    %cst_16 = arith.constant 0.000000e+00 : f32
    %28 = vector.shape_cast %27 : vector<1x128xi1> to vector<1x128xi1>
    %29 = vector.broadcast %28 : vector<1x128xi1> to vector<4x128xi1>
    %30 = vector.broadcast %cst_16 : f32 to vector<4x128xf32>
    %31 = arith.select %29, %22, %30 : vector<4x128xi1>, vector<4x128xf32>
    %32 = arith.extui %27 : vector<1x128xi1> to vector<1x128xi32>
    %33 = arith.sitofp %32 : vector<1x128xi32> to vector<1x128xf32>
    %c4 = arith.constant 4 : index
    %c0_17 = arith.constant 0 : index
    %34 = vector.load %arg7[%c4, %c0_17] : memref<45x128xf32, #tpu.memory_space<vmem>>, vector<4x128xf32>
    tpu.vector_store %arg7[%c4, %c0_17], %31 {strides = array<i32>} : memref<45x128xf32, #tpu.memory_space<vmem>>, vector<4x128xf32>,
    %c37 = arith.constant 37 : index
    %c0_18 = arith.constant 0 : index
    %35 = vector.load %arg7[%c37, %c0_18] : memref<45x128xf32, #tpu.memory_space<vmem>>, vector<1x128xf32>
    tpu.vector_store %arg7[%c37, %c0_18], %33 {strides = array<i32>} : memref<45x128xf32, #tpu.memory_space<vmem>>, vector<1x128xf32>,
    %c0_19 = arith.constant 0 : index
    %c130 = arith.constant 130 : index
    %36 = vector.load %arg6[%c0_19, %c130] : memref<4x384xf32, #tpu.memory_space<vmem>>, vector<4x128xf32>
    %c0_i32_20 = arith.constant 0 : i32
    %37 = vector.broadcast %c0_i32_20 : i32 to vector<1x128xi32>
    %38 = arith.cmpi sge, %7, %37 : vector<1x128xi32>
    %c14_i32 = arith.constant 14 : i32
    %39 = vector.broadcast %c14_i32 : i32 to vector<1x128xi32>
    %40 = arith.cmpi slt, %7, %39 : vector<1x128xi32>
    %41 = arith.andi %38, %40 : vector<1x128xi1>
    %cst_21 = arith.constant 0.000000e+00 : f32
    %42 = vector.shape_cast %41 : vector<1x128xi1> to vector<1x128xi1>
    %43 = vector.broadcast %42 : vector<1x128xi1> to vector<4x128xi1>
    %44 = vector.broadcast %cst_21 : f32 to vector<4x128xf32>
    %45 = arith.select %43, %36, %44 : vector<4x128xi1>, vector<4x128xf32>
    %46 = arith.extui %41 : vector<1x128xi1> to vector<1x128xi32>
    %47 = arith.sitofp %46 : vector<1x128xi32> to vector<1x128xf32>
    %c8 = arith.constant 8 : index
    %c0_22 = arith.constant 0 : index
    %48 = vector.load %arg7[%c8, %c0_22] : memref<45x128xf32, #tpu.memory_space<vmem>>, vector<4x128xf32>
    tpu.vector_store %arg7[%c8, %c0_22], %45 {strides = array<i32>} : memref<45x128xf32, #tpu.memory_space<vmem>>, vector<4x128xf32>,
    %c38 = arith.constant 38 : index
    %c0_23 = arith.constant 0 : index
    %49 = vector.load %arg7[%c38, %c0_23] : memref<45x128xf32, #tpu.memory_space<vmem>>, vector<1x128xf32>
    tpu.vector_store %arg7[%c38, %c0_23], %47 {strides = array<i32>} : memref<45x128xf32, #tpu.memory_space<vmem>>, vector<1x128xf32>,
    %c0_24 = arith.constant 0 : index
    %c129 = arith.constant 129 : index
    %50 = vector.load %arg6[%c0_24, %c129] : memref<4x384xf32, #tpu.memory_space<vmem>>, vector<4x128xf32>
    %c0_i32_25 = arith.constant 0 : i32
    %51 = vector.broadcast %c0_i32_25 : i32 to vector<1x128xi32>
    %52 = arith.cmpi sge, %7, %51 : vector<1x128xi32>
    %c15_i32 = arith.constant 15 : i32
    %53 = vector.broadcast %c15_i32 : i32 to vector<1x128xi32>
    %54 = arith.cmpi slt, %7, %53 : vector<1x128xi32>
    %55 = arith.andi %52, %54 : vector<1x128xi1>
    %cst_26 = arith.constant 0.000000e+00 : f32
    %56 = vector.shape_cast %55 : vector<1x128xi1> to vector<1x128xi1>
    %57 = vector.broadcast %56 : vector<1x128xi1> to vector<4x128xi1>
    %58 = vector.broadcast %cst_26 : f32 to vector<4x128xf32>
    %59 = arith.select %57, %50, %58 : vector<4x128xi1>, vector<4x128xf32>
    %60 = arith.extui %55 : vector<1x128xi1> to vector<1x128xi32>
    %61 = arith.sitofp %60 : vector<1x128xi32> to vector<1x128xf32>
    %c12 = arith.constant 12 : index
    %c0_27 = arith.constant 0 : index
    %62 = vector.load %arg7[%c12, %c0_27] : memref<45x128xf32, #tpu.memory_space<vmem>>, vector<4x128xf32>
    tpu.vector_store %arg7[%c12, %c0_27], %59 {strides = array<i32>} : memref<45x128xf32, #tpu.memory_space<vmem>>, vector<4x128xf32>,
    %c39 = arith.constant 39 : index
    %c0_28 = arith.constant 0 : index
    %63 = vector.load %arg7[%c39, %c0_28] : memref<45x128xf32, #tpu.memory_space<vmem>>, vector<1x128xf32>
    tpu.vector_store %arg7[%c39, %c0_28], %61 {strides = array<i32>} : memref<45x128xf32, #tpu.memory_space<vmem>>, vector<1x128xf32>,
    %c0_29 = arith.constant 0 : index
    %c128_30 = arith.constant 128 : index
    %64 = vector.load %arg6[%c0_29, %c128_30] : memref<4x384xf32, #tpu.memory_space<vmem>>, vector<4x128xf32>
    %cst_31 = arith.constant 1.000000e+00 : f32
    %65 = vector.broadcast %cst_31 : f32 to vector<1x128xf32>
    %c16 = arith.constant 16 : index
    %c0_32 = arith.constant 0 : index
    %66 = vector.load %arg7[%c16, %c0_32] : memref<45x128xf32, #tpu.memory_space<vmem>>, vector<4x128xf32>
    tpu.vector_store %arg7[%c16, %c0_32], %64 {strides = array<i32>} : memref<45x128xf32, #tpu.memory_space<vmem>>, vector<4x128xf32>,
    %c40 = arith.constant 40 : index
    %c0_33 = arith.constant 0 : index
    %67 = vector.load %arg7[%c40, %c0_33] : memref<45x128xf32, #tpu.memory_space<vmem>>, vector<1x128xf32>
    tpu.vector_store %arg7[%c40, %c0_33], %65 {strides = array<i32>} : memref<45x128xf32, #tpu.memory_space<vmem>>, vector<1x128xf32>,
    %c0_34 = arith.constant 0 : index
    %c127 = arith.constant 127 : index
    %68 = vector.load %arg6[%c0_34, %c127] : memref<4x384xf32, #tpu.memory_space<vmem>>, vector<4x128xf32>
    %c1_i32 = arith.constant 1 : i32
    %69 = vector.broadcast %c1_i32 : i32 to vector<1x128xi32>
    %70 = arith.cmpi sge, %7, %69 : vector<1x128xi32>
    %c16_i32 = arith.constant 16 : i32
    %71 = vector.broadcast %c16_i32 : i32 to vector<1x128xi32>
    %72 = arith.cmpi slt, %7, %71 : vector<1x128xi32>
    %73 = arith.andi %70, %72 : vector<1x128xi1>
    %cst_35 = arith.constant 0.000000e+00 : f32
    %74 = vector.shape_cast %73 : vector<1x128xi1> to vector<1x128xi1>
    %75 = vector.broadcast %74 : vector<1x128xi1> to vector<4x128xi1>
    %76 = vector.broadcast %cst_35 : f32 to vector<4x128xf32>
    %77 = arith.select %75, %68, %76 : vector<4x128xi1>, vector<4x128xf32>
    %78 = arith.extui %73 : vector<1x128xi1> to vector<1x128xi32>
    %79 = arith.sitofp %78 : vector<1x128xi32> to vector<1x128xf32>
    %c20 = arith.constant 20 : index
    %c0_36 = arith.constant 0 : index
    %80 = vector.load %arg7[%c20, %c0_36] : memref<45x128xf32, #tpu.memory_space<vmem>>, vector<4x128xf32>
    tpu.vector_store %arg7[%c20, %c0_36], %77 {strides = array<i32>} : memref<45x128xf32, #tpu.memory_space<vmem>>, vector<4x128xf32>,
    %c41 = arith.constant 41 : index
    %c0_37 = arith.constant 0 : index
    %81 = vector.load %arg7[%c41, %c0_37] : memref<45x128xf32, #tpu.memory_space<vmem>>, vector<1x128xf32>
    tpu.vector_store %arg7[%c41, %c0_37], %79 {strides = array<i32>} : memref<45x128xf32, #tpu.memory_space<vmem>>, vector<1x128xf32>,
    %c0_38 = arith.constant 0 : index
    %c126 = arith.constant 126 : index
    %82 = vector.load %arg6[%c0_38, %c126] : memref<4x384xf32, #tpu.memory_space<vmem>>, vector<4x128xf32>
    %c2_i32 = arith.constant 2 : i32
    %83 = vector.broadcast %c2_i32 : i32 to vector<1x128xi32>
    %84 = arith.cmpi sge, %7, %83 : vector<1x128xi32>
    %c16_i32_39 = arith.constant 16 : i32
    %85 = vector.broadcast %c16_i32_39 : i32 to vector<1x128xi32>
    %86 = arith.cmpi slt, %7, %85 : vector<1x128xi32>
    %87 = arith.andi %84, %86 : vector<1x128xi1>
    %cst_40 = arith.constant 0.000000e+00 : f32
    %88 = vector.shape_cast %87 : vector<1x128xi1> to vector<1x128xi1>
    %89 = vector.broadcast %88 : vector<1x128xi1> to vector<4x128xi1>
    %90 = vector.broadcast %cst_40 : f32 to vector<4x128xf32>
    %91 = arith.select %89, %82, %90 : vector<4x128xi1>, vector<4x128xf32>
    %92 = arith.extui %87 : vector<1x128xi1> to vector<1x128xi32>
    %93 = arith.sitofp %92 : vector<1x128xi32> to vector<1x128xf32>
    %c24 = arith.constant 24 : index
    %c0_41 = arith.constant 0 : index
    %94 = vector.load %arg7[%c24, %c0_41] : memref<45x128xf32, #tpu.memory_space<vmem>>, vector<4x128xf32>
    tpu.vector_store %arg7[%c24, %c0_41], %91 {strides = array<i32>} : memref<45x128xf32, #tpu.memory_space<vmem>>, vector<4x128xf32>,
    %c42 = arith.constant 42 : index
    %c0_42 = arith.constant 0 : index
    %95 = vector.load %arg7[%c42, %c0_42] : memref<45x128xf32, #tpu.memory_space<vmem>>, vector<1x128xf32>
    tpu.vector_store %arg7[%c42, %c0_42], %93 {strides = array<i32>} : memref<45x128xf32, #tpu.memory_space<vmem>>, vector<1x128xf32>,
    %c0_43 = arith.constant 0 : index
    %c125 = arith.constant 125 : index
    %96 = vector.load %arg6[%c0_43, %c125] : memref<4x384xf32, #tpu.memory_space<vmem>>, vector<4x128xf32>
    %c3_i32 = arith.constant 3 : i32
    %97 = vector.broadcast %c3_i32 : i32 to vector<1x128xi32>
    %98 = arith.cmpi sge, %7, %97 : vector<1x128xi32>
    %c16_i32_44 = arith.constant 16 : i32
    %99 = vector.broadcast %c16_i32_44 : i32 to vector<1x128xi32>
    %100 = arith.cmpi slt, %7, %99 : vector<1x128xi32>
    %101 = arith.andi %98, %100 : vector<1x128xi1>
    %cst_45 = arith.constant 0.000000e+00 : f32
    %102 = vector.shape_cast %101 : vector<1x128xi1> to vector<1x128xi1>
    %103 = vector.broadcast %102 : vector<1x128xi1> to vector<4x128xi1>
    %104 = vector.broadcast %cst_45 : f32 to vector<4x128xf32>
    %105 = arith.select %103, %96, %104 : vector<4x128xi1>, vector<4x128xf32>
    %106 = arith.extui %101 : vector<1x128xi1> to vector<1x128xi32>
    %107 = arith.sitofp %106 : vector<1x128xi32> to vector<1x128xf32>
    %c28 = arith.constant 28 : index
    %c0_46 = arith.constant 0 : index
    %108 = vector.load %arg7[%c28, %c0_46] : memref<45x128xf32, #tpu.memory_space<vmem>>, vector<4x128xf32>
    tpu.vector_store %arg7[%c28, %c0_46], %105 {strides = array<i32>} : memref<45x128xf32, #tpu.memory_space<vmem>>, vector<4x128xf32>,
    %c43 = arith.constant 43 : index
    %c0_47 = arith.constant 0 : index
    %109 = vector.load %arg7[%c43, %c0_47] : memref<45x128xf32, #tpu.memory_space<vmem>>, vector<1x128xf32>
    tpu.vector_store %arg7[%c43, %c0_47], %107 {strides = array<i32>} : memref<45x128xf32, #tpu.memory_space<vmem>>, vector<1x128xf32>,
    %c0_48 = arith.constant 0 : index
    %c124 = arith.constant 124 : index
    %110 = vector.load %arg6[%c0_48, %c124] : memref<4x384xf32, #tpu.memory_space<vmem>>, vector<4x128xf32>
    %c4_i32 = arith.constant 4 : i32
    %111 = vector.broadcast %c4_i32 : i32 to vector<1x128xi32>
    %112 = arith.cmpi sge, %7, %111 : vector<1x128xi32>
    %c16_i32_49 = arith.constant 16 : i32
    %113 = vector.broadcast %c16_i32_49 : i32 to vector<1x128xi32>
    %114 = arith.cmpi slt, %7, %113 : vector<1x128xi32>
    %115 = arith.andi %112, %114 : vector<1x128xi1>
    %cst_50 = arith.constant 0.000000e+00 : f32
    %116 = vector.shape_cast %115 : vector<1x128xi1> to vector<1x128xi1>
    %117 = vector.broadcast %116 : vector<1x128xi1> to vector<4x128xi1>
    %118 = vector.broadcast %cst_50 : f32 to vector<4x128xf32>
    %119 = arith.select %117, %110, %118 : vector<4x128xi1>, vector<4x128xf32>
    %120 = arith.extui %115 : vector<1x128xi1> to vector<1x128xi32>
    %121 = arith.sitofp %120 : vector<1x128xi32> to vector<1x128xf32>
    %c32 = arith.constant 32 : index
    %c0_51 = arith.constant 0 : index
    %122 = vector.load %arg7[%c32, %c0_51] : memref<45x128xf32, #tpu.memory_space<vmem>>, vector<4x128xf32>
    tpu.vector_store %arg7[%c32, %c0_51], %119 {strides = array<i32>} : memref<45x128xf32, #tpu.memory_space<vmem>>, vector<4x128xf32>,
    %c44 = arith.constant 44 : index
    %c0_52 = arith.constant 0 : index
    %123 = vector.load %arg7[%c44, %c0_52] : memref<45x128xf32, #tpu.memory_space<vmem>>, vector<1x128xf32>
    tpu.vector_store %arg7[%c44, %c0_52], %121 {strides = array<i32>} : memref<45x128xf32, #tpu.memory_space<vmem>>, vector<1x128xf32>,
    %c0_53 = arith.constant 0 : index
    %c0_54 = arith.constant 0 : index
    %124 = vector.load %arg3[%c0_53, %c0_54] : memref<8x45xf32, #tpu.memory_space<vmem>>, vector<8x45xf32>
    %c0_55 = arith.constant 0 : index
    %c0_56 = arith.constant 0 : index
    %125 = vector.load %arg7[%c0_55, %c0_56] : memref<45x128xf32, #tpu.memory_space<vmem>>, vector<45x128xf32>
    %cst_57 = arith.constant dense<0.000000e+00> : vector<8x128xf32>
    %126 = tpu.matmul %124, %125, %cst_57 {dimension_numbers = #tpu.dot_dimension_numbers<[1], [0], [0], [1], [0, 0, 1, 1], [], []>} : vector<8x45xf32>, vector<45x128xf32>, vector<8x128xf32> -> vector<8x128xf32>
    %c0_58 = arith.constant 0 : index
    %c0_59 = arith.constant 0 : index
    %c0_60 = arith.constant 0 : index
    %127 = vector.load %arg5[%c0_58, %c0_59, %c0_60] : memref<1x8x128xf32, #tpu.memory_space<vmem>>, vector<1x8x128xf32>
    %128 = vector.shape_cast %127 : vector<1x8x128xf32> to vector<8x128xf32>
    %129 = vector.shape_cast %126 : vector<8x128xf32> to vector<1x8x128xf32>
    tpu.vector_store %arg5[%c0_58, %c0_59, %c0_60], %129 {strides = array<i32>} : memref<1x8x128xf32, #tpu.memory_space<vmem>>, vector<1x8x128xf32>,
    return
  }
  func.func @transform_0(%arg0: i32, %arg1: i32) -> (i32, i32, i32) {
    %c0_i32 = arith.constant 0 : i32
    %c0_i32_0 = arith.constant 0 : i32
    return %arg0, %c0_i32, %arg1 : i32, i32, i32
  }
  func.func @transform_1(%arg0: i32, %arg1: i32) -> (i32, i32) {
    %c0_i32 = arith.constant 0 : i32
    %c0_i32_0 = arith.constant 0 : i32
    %c0_i32_1 = arith.constant 0 : i32
    return %c0_i32, %c0_i32_0 : i32, i32
  }
  func.func @transform_2(%arg0: i32, %arg1: i32) -> (i32, i32) {
    %c0_i32 = arith.constant 0 : i32
    %c0_i32_0 = arith.constant 0 : i32
    %c0_i32_1 = arith.constant 0 : i32
    return %c0_i32, %c0_i32_0 : i32, i32
  }
  func.func @transform_3(%arg0: i32, %arg1: i32) -> (i32, i32, i32) {
    %c0_i32 = arith.constant 0 : i32
    %c0_i32_0 = arith.constant 0 : i32
    return %arg0, %c0_i32, %arg1 : i32, i32, i32
  }
}

</mosaic_0001>

<bundles_post_ra>
// kernel: tpu_custom_call.1
= control target key start
LH: loop header
LB: loop body
LE: loop exit
PB: predicated region body
PF: predicated region fallthrough
CT: control target
= control target key end

     0   :  { %s1303_s0 = inlined_call_operand.hbm [shape: f32[2,4,256], index: 0, kind: input, shape index: {}]   ;;  %s1304_s1 = inlined_call_operand.hbm [shape: f32[8,45], index: 1, kind: input, shape index: {}]   ;;  %s1305_s2 = inlined_call_operand.vmem [shape: s32[1,128], index: 2, kind: input, shape index: {}]   ;;  %s1306_s3 = inlined_call_operand.hbm [shape: f32[2,8,256], index: 3, kind: output, shape index: {}]  }
   0x1   :  { %1314 = sst [smem:[#allocation16_spill]] %s1304_s1 }
   0x2   :  { %8 = vsyncpa [#allocation5], 0 }
   0x3   :  { %10 = vsyncpa [#allocation5 + $0x1], 0 }
   0x4   :  { %11 = vsyncpa [#allocation8], 0 }
   0x5   :  { %12 = vsyncpa [#allocation6], 0 }
   0x6   :  { %14 = vsyncpa [#allocation6 + $0x1], 0  ;;  %s963_s12 = smov 0   ;;  %s965_s13 = smov 0  }
   0x7   :  { %s967_s14 = smov 0   ;;  %s969_s15 = smov 0  }
   0x8   :  { %s971_s16 = smov 0   ;;  %s973_s17 = smov 0  }
   0x9   :  { %s975_s18 = smov 0   ;;  %s977_s19 = smov 0  }
   0xa LB: > { %1315 = sst [smem:[#allocation13_spill]] %s896_s12  ;;  %s600_s20 = sadd.s32 4294967295, %s924_s19   ;;  %s924_s19 = sphi %s977_s19, %s20_s19   ;;  %s920_s18 = sphi %s975_s18, %s1358_s18   ;;  %s916_s17 = sphi %s973_s17, %s1357_s17   ;;  %s912_s16 = sphi %s971_s16, %s1356_s16   ;;  %s908_s15 = sphi %s969_s15, %s1355_s15   ;;  %s904_s14 = sphi %s967_s14, %s1354_s14   ;;  %s900_s13 = sphi %s965_s13, %s1353_s13   ;;  %s896_s12 = sphi %s963_s12, %s1352_s12  }
   0xb   : > { %s601_s21 = sadd.s32 4294967294, %s924_s19   ;;  %p54_p0 = scmp.ne.s32.totalorder %s900_s13, %s896_s12 }
   0xc   : > { %p1007_p1 = scmp.eq.s32.totalorder %s600_s20, 0  ;;  %p1011_p2 = scmp.eq.s32.totalorder %s600_s20, 3 }
   0xd   : > { %p128_p3 = scmp.eq.s32.totalorder %s601_s21, 3  ;;  %p602_p5 = scmp.ge.s32.totalorder %s924_s19, 1 }
   0xe   : > { %s1316_s22 = scalar_select %p1007_p1, 1, 0 }
   0xf   : > { %s1317_s23 = scalar_select %p1011_p2, 1, 0 }
  0x10   : > { %p1017_p4 = por %p1007_p1, %p54_p0  ;;  %p1022_p6 = por %p128_p3, %p54_p0 }
  0x11   : > { %p135_p7 = scmp.lt.s32.totalorder %s924_s19, 5  ;;  %s926_s27 = smov [#allocation7]  }
  0x12   : > { %s1318_s24 = scalar_select %p1017_p4, 1, 0 }
  0x13   : > { %s1319_s25 = scalar_select %p1022_p6, 1, 0 }
  0x14   : > { %p1027_p8 = pnand %p602_p5, %p135_p7  ;;  %s148_s28 = sshll.u32 %s926_s27, 4  ;;  %s149_s28 = int_to_ptr.vmem [resolvable:$true] %s148_s28 }
  0x15   : > { %1320 = sst [smem:[#allocation14_spill]] %s1319_s25  ;;  %s29_s30 = sadd.s32 1, %s916_s17 }
  0x16   : > { %s1321_s26 = scalar_select %p1027_p8, 1, 0 }
  0x17   : > { %p667_p9 = pneg %p1027_p8  ;;  %s1323_s1 = sld [smem:[#allocation16_spill]] }
  0x19   : > { %p1035_p10 = pnand %p667_p9, %p1007_p1 }
  0x1b   : > { %p766_p12 = pneg %p1035_p10 }
  0x1d   : > { %s764_s6 = scalar_lea.hbm %s1323_s1, 128 }
  0x1e   : > { %p765_p11 = scmp.ne.s32.totalorder %s1323_s1, %s764_s6  ;;  %p771_p3 = scmp.lt.u32.totalorder %s764_s6, %s1323_s1 }
  0x20   : > { %p767_p13 = pnand %p766_p12, %p765_p11 }
  0x22   : > { %p768_p0 = pneg %p767_p13 }
  0x24   : > { %p773_p5 = pnand %p771_p3, %p768_p0 }
  0x26   : > { %776 = shalt.err (!%p773_p5)
}
  0x27   : > { %s777_s11 = scalar_lea.vmem %s149_s28, 128  ;;  %p785_p1 = scmp.lt.s32.totalorder %s149_s28, %s149_s28 }
  0x28   : > { %p778_p7 = scmp.ne.s32.totalorder %s149_s28, %s777_s11  ;;  %p786_p4 = scmp.lt.s32.totalorder %s777_s11, %s777_s11 }
  0x2a   : > { %p780_p9 = pnand %p778_p7, %p766_p12  ;;  %p787_p8 = por %p786_p4, %p785_p1 }
  0x2c   : > { %p781_p6 = pneg %p780_p9 }
  0x2e   : > { %p788_p2 = pnand %p787_p8, %p781_p6 }
  0x30   : > { %791 = shalt.err (!%p788_p2)
}
  0x31   : > { %670 = dma.hbm_to_vmem [thread:$0]  (!%p1035_p10), %s1323_s1, 128, %s149_s28, [#allocation8]  }
  0x32   : > { %p30_p1 = scmp.ge.s32.totalorder %s29_s30, 2  ;;  %s32_s27 = sadd.s32 1, %s920_s18 }
  0x33   : > { %s41_s4 = sadd.s32 1, %s904_s14  ;;  %p48_p2 = scmp.ne.s32.totalorder %s904_s14, %s900_s13 }
  0x34   : > { %s1360_s30 = smov (%p30_p1, %s29_s30), 0  ;;  %s1362_s27 = smov (!%p30_p1, %s32_s27), %s920_s18 }
  0x35   : > { %1324 = sst [smem:[#allocation15_spill]] %s1360_s30  ;;  %s37_s29 = ssub.s32 %s916_s17, %s1360_s30 }
  0x36   : > { %p49_p4 = scmp.eq.s32.totalorder %s924_s19, 0  ;;  %p34_p6 = scmp.ge.s32.totalorder %s1362_s27, 2 }
  0x37   : > { %p1325_p8 = scmp.ne.s32.totalorder %s1317_s23, 0  ;;  %p680_p12 = scmp.lt.s32.totalorder %s924_s19, 4 }
  0x38   : > { %p1072_p10 = por %p49_p4, %p48_p2  ;;  %s1364_s27 = smov (%p34_p6, %s1362_s27), 0 }
  0x39   : > { %p1068_p11 = por %p1325_p8, %p48_p2  ;;  %s162_s6 = sand.u32 1, %s904_s14  }
  0x3a   : > { %s606_s7 = sshll.u32 %s920_s18, 1  ;;  %s36_s8 = ssub.s32 %s920_s18, %s1364_s27 }
  0x3b   : > { %s38_s9 = sor.u32 %s37_s29, %s36_s8  ;;  %s605_s10 = sshll.u32 %s162_s6, 2 }
  0x3c   : > { %p39_p13 = scmp.eq.s32.totalorder %s38_s9, 0  ;;  %s171_s23 = sadd.s32 %s916_s17, %s606_s7 }
  0x3d   : > { %s166_s11 = scalar_lea.vmem [#allocation4], %s605_s10  ;;  %s607_s1 = sshll.u32 %s171_s23, 6 }
  0x3e   : > { %s175_s20 = sshll.u32 %s166_s11, 4  ;;  %s1092_s12 = scalar_lea.hbm %s1303_s0, %s607_s1  ;;  %s1087_s20 = int_to_ptr.vmem [resolvable:$true] %s175_s20 }
  0x3f   : > { %s1085_s21 = scalar_select %p39_p13, %s904_s14, %s41_s4  }
  0x40   : > { %p1098_p0 = pnand %p680_p12, %p1072_p10  ;;  %s163_s4 = scalar_lea.sflag [#allocation5], %s162_s6 }
  0x41   : > { %s792_s7 = scalar_lea.hbm %s1092_s12, 64  ;;  %s797_s30 = scalar_lea.hbm %s1303_s0, 256 }
  0x42   : > { %p793_p3 = scmp.ne.s32.totalorder %s1092_s12, %s792_s7  ;;  %p794_p5 = pneg %p1098_p0 }
  0x43   : > { %p798_p1 = scmp.lt.u32.totalorder %s1092_s12, %s1303_s0  ;;  %p799_p2 = scmp.lt.u32.totalorder %s797_s30, %s792_s7 }
  0x44   : > { %p795_p7 = pnand %p794_p5, %p793_p3  ;;  %p801_p6 = scmp.lt.u32.totalorder %s792_s7, %s1092_s12 }
  0x45   : > { %p800_p4 = por %p799_p2, %p798_p1 }
  0x46   : > { %p796_p9 = pneg %p795_p7 }
  0x47   : > { %p802_p8 = por %p801_p6, %p800_p4 }
  0x49   : > { %p803_p10 = pnand %p802_p8, %p796_p9 }
  0x4b   : > { %806 = shalt.err (!%p803_p10)
}
  0x4c   : > { %s807_s6 = scalar_lea.vmem %s1087_s20, 64  ;;  %s927_s9 = smov [#allocation4]  }
  0x4d   : > { %p808_p12 = scmp.ne.s32.totalorder %s1087_s20, %s807_s6  ;;  %s812_s10 = sshll.u32 %s927_s9, 4  ;;  %s813_s10 = int_to_ptr.vmem [resolvable:$false] %s812_s10 }
  0x4e   : > { %s814_s23 = scalar_lea.vmem %s813_s10, 128  ;;  %p815_p7 = scmp.lt.s32.totalorder %s1087_s20, %s813_s10 }
  0x4f   : > { %p810_p13 = pnand %p808_p12, %p794_p5  ;;  %p816_p1 = scmp.lt.s32.totalorder %s814_s23, %s807_s6 }
  0x51   : > { %p811_p3 = pneg %p810_p13  ;;  %p817_p2 = por %p816_p1, %p815_p7 }
  0x53   : > { %p818_p4 = pnand %p817_p2, %p811_p3 }
  0x55   : > { %821 = shalt.err (!%p818_p4)
}
  0x56   : > { %674 = dma.hbm_to_vmem [thread:$0]  (!%p1098_p0), %s1092_s12, 64, %s1087_s20, %s163_s4  }
  0x57   : > { %p1329_p9 = scmp.ne.s32.totalorder %s1321_s26, 0 }
  0x58   : > { %s1130_s11 = sand.u32 (!%p1329_p9), 1, %s900_s13   ;;  %p1330_p5 = scmp.ne.s32.totalorder (!%p1329_p9), %s1318_s24, 0 }
  0x59   : > { %184 = sbr.rel (%p1329_p9) target bundleno = 494 (0x1ee), region = 32  ;;  %s609_s7 = sshll.u32 (!%p1329_p9), %s1130_s11, 2 }
  0x5a   : > { %s187_s1 = scalar_lea.sflag (!%p1329_p9), [#allocation5], %s1130_s11  ;;  %s190_s25 = scalar_lea.vmem (!%p1329_p9), [#allocation4], %s609_s7 }
  0x60   : > { %883 = dma.done.wait (%p1330_p5), %s187_s1, 64  }
  0x61   : > { %885 = vsyncadd (%p1330_p5), %s187_s1, 4294967232  ;;  %p1331_p6 = scmp.ne.s32.totalorder %s1316_s22, 0 }
  0x63   : > { %887 = dma.done.wait (%p1331_p6), [#allocation8], 128  }
  0x64   : > { %889 = vsyncadd (%p1331_p6), [#allocation8], 4294967168  ;;  %v928_v0 = vmov 0.0   ;;  %v219_v1 = vld [vmem:[%s190_s25] sm:$0xf]  ;;  %s929_s22 = smov 125   ;;  %v227_v26 = vlaneseq }
  0x65   : > { %218 = vst [vmem:[#allocation2 + $0x8] sm:$0xf] %v928_v0  ;;  %217 = vst [vmem:[#allocation2] sm:$0xf] %v928_v0  ;;  %v221_v2 = vld [vmem:[%s1305_s2] sm:$0x1] }
  0x66   : > { %220 = vst [vmem:[#allocation2 + $0x4] sm:$0xf] %v219_v1  ;;  %vm223_vm0 = vcmp.ge.s32.totalorder %v221_v2, 0  ;;  %vm246_vm1 = vcmp.lt.s32.totalorder %v221_v2, 13  ;;  %vm268_vm2 = vcmp.lt.s32.totalorder %v221_v2, 14  ;;  %vm290_vm5 = vcmp.lt.s32.totalorder %v221_v2, 15 }
  0x67   : > { %vm1148_vm3 = vmand %vm223_vm0, %vm246_vm1  ;;  %vm224_vm7 = vcmp.lt.s32.totalorder %v221_v2, 12  ;;  %s930_s24 = smov 124   ;;  %vm315_vm9 = vcmp.ge.s32.totalorder %v221_v2, 1  ;;  %vm316_vm10 = vcmp.lt.s32.totalorder %v221_v2, 16  ;;  %vm338_vm11 = vcmp.ge.s32.totalorder %v221_v2, 2  ;;  %s931_s20 = smov 126  }
  0x68   : > { %v613_v4 = vsel %vm1148_vm3, 1.0, %v928_v0  ;;  %vm1156_vm4 = vmand %vm223_vm0, %vm268_vm2  ;;  %vm360_vm14 = vcmp.ge.s32.totalorder %v221_v2, 3  ;;  %s932_s29 = smov 127   ;;  %s933_s4 = smov 1   ;;  %v934_v23 = vmov 0.0|0.0   ;;  %v935_v25 = vmov 1.0  }
  0x69   : > { %266 = vst [vmem:[#allocation3 + $0x25] sm:$0x1] %v613_v4  ;;  %v614_v6 = vsel %vm1156_vm4, 1.0, %v928_v0  ;;  %vm1164_vm6 = vmand %vm223_vm0, %vm290_vm5  ;;  %649 = vmatprep.subr.bf16.mxu0 %v934_v23  ;;  %s936_s30 = smov 2   ;;  %s937_s28 = smov 3   ;;  %vm939_vm2 = vmmov 0  }
  0x6a   : > { %288 = vst [vmem:[#allocation3 + $0x26] sm:$0x1] %v614_v6  ;;  %v615_v8 = vsel %vm1164_vm6, 1.0, %v928_v0  ;;  %vm1173_vm8 = vmand %vm223_vm0, %vm224_vm7  ;;  %vm382_vm0 = vcmp.ge.s32.totalorder %v221_v2, 4  ;;  %s938_s8 = smov 4   ;;  %646 = vmatprep.mubr.msk.f32.mxu0 %vm939_vm2, %v928_v0  ;;  %v228_v27 = vshrl.u32 %v227_v26, 7 }
  0x6b   : > { %310 = vst [vmem:[#allocation3 + $0x27] sm:$0x1] %v615_v8  ;;  %v612_v12 = vsel %vm1173_vm8, 1.0, %v928_v0  ;;  %vm1181_vm12 = vmand %vm315_vm9, %vm316_vm10  ;;  %v940_v29 = vmov 0   ;;  %vm260_vm5 = vcmask 1022976   ;;  %vm282_vm9 = vcmask 1031168  }
  0x6c   : > { %244 = vst [vmem:[#allocation3 + $0x24] sm:$0x1] %v612_v12  ;;  %v616_v15 = vsel %vm1181_vm12, 1.0, %v928_v0  ;;  %vm1189_vm13 = vmand %vm338_vm11, %vm316_vm10  ;;  %v1215_v28 = vsub.s32 0, %v228_v27  ;;  %v248_v30 = vsel %vm1148_vm3, 1, %v940_v29  ;;  %v270_v34 = vsel %vm1156_vm4, 1, %v940_v29 }
  0x6d   : > { %v245_v9 = vld [vmem:[#allocation2 + $0x4] sm:$0xff]  ;;  %336 = vst [vmem:[#allocation3 + $0x29] sm:$0x1] %v616_v15  ;;  %v617_v17 = vsel %vm1189_vm13, 1.0, %v928_v0  ;;  %vm1197_vm15 = vmand %vm360_vm14, %vm316_vm10  ;;  %v292_v38 = vsel %vm1164_vm6, 1, %v940_v29  ;;  %v226_v44 = vsel %vm1173_vm8, 1, %v940_v29 }
  0x6e   : > { %256 = vrot.lane.b32.xlu1 %v245_v9, %s929_s22  ;;  %v255_v10 = vcombine.high %v245_v9, %v245_v9  ;;  %234 = vrot.lane.b32.xlu0 %v245_v9, %s930_s24  ;;  %v311_v14 = vld [vmem:[#allocation2 + $0x4] sm:$0xf]  ;;  %358 = vst [vmem:[#allocation3 + $0x2a] sm:$0x1] %v617_v17  ;;  %v618_v20 = vsel %vm1197_vm15, 1.0, %v928_v0  ;;  %vm1205_vm1 = vmand %vm382_vm0, %vm316_vm10  ;;  %v252_v31 = vrot.slane %v248_v30, %v1215_v28  ;;  %v318_v45 = vsel %vm1181_vm12, 1, %v940_v29 }
  0x6f   : > { %312 = vst [vmem:[#allocation3 + $0x10] sm:$0xf] %v311_v14  ;;  %v314_v18 = vld [vmem:[#allocation2] sm:$0xff]  ;;  %380 = vst [vmem:[#allocation3 + $0x2b] sm:$0x1] %v618_v20  ;;  %v619_v24 = vsel %vm1205_vm1, 1.0, %v928_v0  ;;  %v274_v35 = vrot.slane %v270_v34, %v1215_v28  ;;  %v296_v41 = vrot.slane %v292_v38, %v1215_v28  ;;  %v230_v48 = vrot.slane %v226_v44, %v1215_v28 }
  0x70   : > { %v325_v21 = vcombine.high %v314_v18, %v314_v18  ;;  %402 = vst [vmem:[#allocation3 + $0x2c] sm:$0x1] %v619_v24  ;;  %313 = vst [vmem:[#allocation3 + $0x28] sm:$0x1] %v935_v25  ;;  %vm253_vm7 = vcmp.eq.s32.totalorder %v252_v31, 1  ;;  %vm304_vm4 = vcmask 1039360   ;;  %v322_v49 = vrot.slane %v318_v45, %v1215_v28 }
  0x71   : > { %vm275_vm3 = vcmp.eq.s32.totalorder %v274_v35, 1  ;;  %vm297_vm6 = vcmp.eq.s32.totalorder %v296_v41, 1  ;;  %v340_v52 = vsel %vm1189_vm13, 1, %v940_v29  ;;  %vm238_vm8 = vcmask 1014784   ;;  %v403_v24 = vld [vmem:[#allocation7] sm:$0xff]  ;;  %s611_s6 = sshll.u32 %s1130_s11, 3 }
  0x72   : > { %258 = vrot.lane.b32.xlu1 %v255_v10, %s929_s22  ;;  %278 = vrot.lane.b32.xlu0 %v245_v9, %s931_s20  ;;  %vm330_vm10 = vcmask 7168   ;;  %vm231_vm11 = vcmp.eq.s32.totalorder %v230_v48, 1  ;;  %vm323_vm12 = vcmp.eq.s32.totalorder %v322_v49, 1  ;;  %v344_v55 = vrot.slane %v340_v52, %v1215_v28  ;;  %s623_s9 = sshll.u32 %s912_s16, 1  ;;  %s216_s23 = scalar_lea.vmem [#allocation9], %s611_s6 }
  0x73   : > { %v362_v58 = vsel %vm1197_vm15, 1, %v940_v29  ;;  %vm352_vm14 = vcmask 15360   ;;  %v384_v2 = vsel %vm1205_vm1, 1, %v940_v29  ;;  %vm374_vm0 = vcmask 23552   ;;  %s501_s10 = sadd.s32 %s908_s15, %s623_s9  ;;  %s505_s7 = sshll.u32 %s216_s23, 4  ;;  %s1246_s7 = int_to_ptr.vmem [resolvable:$true] %s505_s7 }
  0x74   : > { %vm345_vm13 = vcmp.eq.s32.totalorder %v344_v55, 1  ;;  %v366_v63 = vrot.slane %v362_v58, %v1215_v28  ;;  %v388_v5 = vrot.slane %v384_v2, %v1215_v28  ;;  %vm396_vm2 = vcmask 31744   ;;  %s624_s1 = sshll.u32 %s501_s10, 7  ;;  %s490_s22 = scalar_lea.sflag [#allocation6], %s1130_s11 }
  0x75   : > { %vm414_vm1 = vcmask 1044480   ;;  %s1251_s26 = scalar_lea.hbm %s1306_s3, %s624_s1  ;;  %s942_s15 = smov [#allocation9]  }
  0x76   : > { %280 = vrot.lane.b32.xlu1 %v255_v10, %s931_s20  ;;  %300 = vrot.lane.b32.xlu0 %v245_v9, %s932_s29  ;;  %vm367_vm15 = vcmp.eq.s32.totalorder %v366_v63, 1  ;;  %s826_s16 = sshll.u32 %s942_s15, 4  ;;  %s827_s16 = int_to_ptr.vmem [resolvable:$false] %s826_s16 }
  0x77   : > { %v409_v20 = vld [vmem:[#allocation3 + $0x28] sm:$0x1f]  ;;  %s828_s20 = scalar_lea.vmem %s827_s16, 256  ;;  %p829_p12 = scmp.lt.s32.totalorder %s1246_s7, %s827_s16 }
  0x7a   : > { %302 = vrot.lane.b32.xlu1 %v255_v10, %s932_s29  ;;  %326 = vrot.lane.b32.xlu0 %v314_v18, %s933_s4 }
  0x7e   : > { %236 = vrot.lane.b32.xlu0 %v255_v10, %s930_s24  ;;  %328 = vrot.lane.b32.xlu1 %v325_v21, %s933_s4  ;;  %s822_s24 = scalar_lea.vmem %s1246_s7, 128 }
  0x7f   : > { %p823_p0 = scmp.ne.s32.totalorder %s1246_s7, %s822_s24  ;;  %p830_p13 = scmp.lt.s32.totalorder %s828_s20, %s822_s24 }
  0x81   : > { %p824_p8 = pnand %p823_p0, %p1068_p11  ;;  %p831_p3 = por %p830_p13, %p829_p12 }
  0x82   : > { %348 = vrot.lane.b32.xlu0 %v314_v18, %s936_s30  ;;  %350 = vrot.lane.b32.xlu1 %v325_v21, %s936_s30 }
  0x83   : > { %p825_p10 = pneg %p824_p8 }
  0x85   : > { %p832_p7 = pnand %p831_p3, %p825_p10 }
  0x86   : > { %370 = vrot.lane.b32.xlu0 %v314_v18, %s937_s28  ;;  %372 = vrot.lane.b32.xlu1 %v325_v21, %s937_s28 }
  0x8a   : > { %392 = vrot.lane.b32.xlu0 %v314_v18, %s938_s8  ;;  %394 = vrot.lane.b32.xlu1 %v325_v21, %s938_s8 }
  0xe0   : > { %v257_v32 = vpop.permute.xlu1 %256  ;;  %v235_v33 = vpop.permute.xlu0 %234 }
  0xe4   : > { %v259_v36 = vpop.permute.xlu1 %258  ;;  %v279_v37 = vpop.permute.xlu0 %278 }
  0xe5   : > { %v261_v39 = vsel %vm260_vm5, %v257_v32, %v259_v36  ;;  %vm389_vm5 = vcmp.eq.s32.totalorder %v388_v5, 1 }
  0xe6   : > { %v263_v40 = vsel %vm253_vm7, %v261_v39, 0.0  ;;  %vm941_vm7 = vmmov 1  }
  0xe7   : > { %265 = vst [vmem:[#allocation3 + $0x4] sm:$0xf] %v263_v40 }
  0xe8   : > { %v281_v42 = vpop.permute.xlu1 %280  ;;  %v301_v43 = vpop.permute.xlu0 %300 }
  0xe9   : > { %v283_v46 = vsel %vm282_vm9, %v279_v37, %v281_v42  ;;  %vm657_vm9 = vmpackc.low %vm414_vm1, %vm941_vm7 }
  0xea   : > { %v285_v47 = vsel %vm275_vm3, %v283_v46, 0.0  ;;  %vm410_vm3 = vcmask 367616  }
  0xeb   : > { %287 = vst [vmem:[#allocation3 + $0x8] sm:$0xf] %v285_v47 }
  0xec   : > { %v303_v50 = vpop.permute.xlu1 %302  ;;  %v327_v51 = vpop.permute.xlu0 %326 }
  0xed   : > { %v305_v53 = vsel %vm304_vm4, %v301_v43, %v303_v50 }
  0xee   : > { %v307_v54 = vsel %vm297_vm6, %v305_v53, 0.0 }
  0xef   : > { %309 = vst [vmem:[#allocation3 + $0xc] sm:$0xf] %v307_v54 }
  0xf0   : > { %v237_v56 = vpop.permute.xlu0 %236  ;;  %v329_v57 = vpop.permute.xlu1 %328 }
  0xf1   : > { %v239_v59 = vsel %vm238_vm8, %v235_v33, %v237_v56  ;;  %v331_v60 = vsel %vm330_vm10, %v327_v51, %v329_v57 }
  0xf2   : > { %v241_v61 = vsel %vm231_vm11, %v239_v59, 0.0  ;;  %v333_v62 = vsel %vm323_vm12, %v331_v60, 0.0 }
  0xf3   : > { %243 = vst [vmem:[#allocation3] sm:$0xf] %v241_v61  ;;  %335 = vst [vmem:[#allocation3 + $0x14] sm:$0xf] %v333_v62 }
  0xf4   : > { %v349_v0 = vpop.permute.xlu0 %348  ;;  %v351_v1 = vpop.permute.xlu1 %350 }
  0xf5   : > { %v353_v3 = vsel %vm352_vm14, %v349_v0, %v351_v1 }
  0xf6   : > { %v355_v4 = vsel %vm345_vm13, %v353_v3, 0.0  ;;  %v405_v11 = vld [vmem:[#allocation3 + $0x8] sm:$0xff] }
  0xf7   : > { %357 = vst [vmem:[#allocation3 + $0x18] sm:$0xf] %v355_v4 }
  0xf8   : > { %v371_v6 = vpop.permute.xlu0 %370  ;;  %v373_v7 = vpop.permute.xlu1 %372 }
  0xf9   : > { %v375_v8 = vsel %vm374_vm0, %v371_v6, %v373_v7 }
  0xfa   : > { %v377_v9 = vsel %vm367_vm15, %v375_v8, 0.0  ;;  %v404_v10 = vld [vmem:[#allocation3] sm:$0xff]  ;;  %v406_v17 = vld [vmem:[#allocation3 + $0x10] sm:$0xff] }
  0xfb   : > { %379 = vst [vmem:[#allocation3 + $0x1c] sm:$0xf] %v377_v9  ;;  %v650_v12 = vpack.c.bf16 %v405_v11, %v404_v10 }
  0xfc   : > { %v393_v13 = vpop.permute.xlu0 %392  ;;  %v395_v14 = vpop.permute.xlu1 %394 }
  0xfd   : > { %v397_v15 = vsel %vm396_vm2, %v393_v13, %v395_v14  ;;  %651 = vmatpush3.bf16.msra.mxu0 %v650_v12 }
  0xfe   : > { %v399_v16 = vsel %vm389_vm5, %v397_v15, 0.0  ;;  %652 = vmatprep.subr.bf16.mxu0 %v934_v23 }
  0xff   : > { %401 = vst [vmem:[#allocation3 + $0x20] sm:$0xf] %v399_v16 }
 0x102   : > { %v407_v18 = vld [vmem:[#allocation3 + $0x18] sm:$0xff] }
 0x103   : > { %v653_v19 = vpack.c.bf16 %v407_v18, %v406_v17 }
 0x105   : > { %654 = vmatpush3.bf16.msra.mxu0 %v653_v19 }
 0x106   : > { %655 = vmatprep.subr.bf16.mxu0 %v934_v23  ;;  %v408_v21 = vld [vmem:[#allocation3 + $0x20] sm:$0xff] }
 0x107   : > { %v656_v22 = vpack.c.bf16 %v409_v20, %v408_v21 }
 0x109   : > { %658 = vmatpush3.bf16.msk.msra.mxu0 %vm657_vm9, %v656_v22 }
 0x10c   : > { %647 = vmatmul.mubr.msk.f32.vlgmr.msra.gmra.mrb[0].mxu0 %vm410_vm3, %v403_v24 }
 0x1df   : > { %v484_v23 = vpop.f32.mrb[0].mxu0 }
 0x1e0   : > { %488 = vst [vmem:[%s216_s23] sm:$0xff] %v484_v23  ;;  %v648_v25 = vpop.f32.mrb[1].mxu0 }
 0x1e1   : > { %835 = shalt.err (!%p832_p7)
}
 0x1e2   : > { %s836_s11 = scalar_lea.hbm %s1251_s26, 128  ;;  %s840_s30 = scalar_lea.hbm %s1306_s3, 512 }
 0x1e3   : > { %p837_p1 = scmp.ne.s32.totalorder %s1251_s26, %s836_s11  ;;  %p841_p9 = scmp.lt.u32.totalorder %s1251_s26, %s1306_s3 }
 0x1e4   : > { %p842_p5 = scmp.lt.u32.totalorder %s840_s30, %s836_s11  ;;  %p844_p0 = scmp.lt.u32.totalorder %s836_s11, %s1251_s26 }
 0x1e5   : > { %p838_p2 = pnand %p837_p1, %p1068_p11 }
 0x1e6   : > { %p843_p6 = por %p842_p5, %p841_p9 }
 0x1e7   : > { %p839_p4 = pneg %p838_p2 }
 0x1e8   : > { %p845_p8 = por %p844_p0, %p843_p6 }
 0x1ea   : > { %p846_p10 = pnand %p845_p8, %p839_p4 }
 0x1ec   : > { %849 = shalt.err (!%p846_p10)
}
 0x1ed   : > { %665 = dma.vmem_to_hbm [thread:$0]  (%p1068_p11), %s1246_s7, 128, %s1251_s26, %s490_s22  }
 0x1ee PF: > { %s1348_s6 = sld [smem:[#allocation13_spill]]  ;;  %s1349_s9 = sld [smem:[#allocation14_spill]] }
 0x1ef   : > { %p682_p12 = scmp.ge.s32.totalorder %s924_s19, 2 }
 0x1f4   : > { %s517_s10 = sand.u32 1, %s1348_s6   ;;  %p1350_p13 = scmp.ne.s32.totalorder %s1349_s9, 0 }
 0x1f5   : > { %s518_s23 = scalar_lea.sflag [#allocation6], %s517_s10 }
 0x1f6   : > { %p676_p3 = pnand %p682_p12, %p1350_p13 }
 0x1f8   : > { %891 = dma.done.wait (!%p676_p3), %s518_s23, 128  }
 0x1f9   : > { %893 = vsyncadd (!%p676_p3), %s518_s23, 4294967168  ;;  %s20_s19 = sadd.s32 1, %s924_s19   ;;  %s1351_s5 = sld [smem:[#allocation15_spill]] }
 0x1fa   : > { %p17_p7 = scmp.ge.s32.totalorder %s20_s19, 6   ;;  %s1352_s12 = smov %s900_s13 }
 0x1fb   : > { %s1353_s13 = smov %s904_s14  ;;  %s1354_s14 = smov %s1085_s21 }
 0x1fc   : > { %s1355_s15 = smov %s916_s17  ;;  %s1356_s16 = smov %s920_s18 }
 0x1fd   : > { %s1358_s18 = smov %s1364_s27  ;;  %19 = sbr.rel (!%p17_p7) target bundleno = 10 (0xa), region = 81 }
 0x1ff   : > { %s1357_s17 = smov %s1351_s5 }
 0x204   :  { %523 = vsyncpa [#allocation5], 1 }
 0x205   :  { %525 = vsyncpa [#allocation5 + $0x1], 1 }
 0x206   :  { %526 = vsyncpa [#allocation8], 1 }
 0x207   :  { %527 = vsyncpa [#allocation6], 1 }
 0x208   :  { %529 = vsyncpa [#allocation6 + $0x1], 1 }

</bundles_post_ra>
